<compile_context>
chip_gen: v7x
topology: tpu7x:2x2x1
jax: 0.10.0
libtpu: 0.0.40
codegen_flags: <defaults>
</compile_context>

<pallas_src>
import functools

import jax
import jax.numpy as jnp
from jax.experimental import pallas as pl
from jax.experimental.pallas import tpu as pltpu


def _fused_pointnet_kernel(*refs, num_layers, nb, n, mxu_dtype):
    """refs = (x_ref, w_0, b_0, ..., w_{L-1}, b_{L-1}, z_0, ..., z_{L-1}).

    x_ref : (nb*n, C0)        activations for nb batches, points on sublanes
    w_i   : (C_in_i, C_out_i) BN-scale-folded conv weight, transposed layout
    b_i   : (1, C_out_i)      folded BN bias (float32)
    z_i   : (nb, C_out_i)     per-batch max over the n points (output)
    """
    x_ref = refs[0]
    wb_refs = refs[1:1 + 2 * num_layers]
    z_refs = refs[1 + 2 * num_layers:]

    act = x_ref[...]                                   # (nb*n, C0), mxu_dtype
    for i in range(num_layers):
        w = wb_refs[2 * i][...]                        # (C_in, C_out)
        b = wb_refs[2 * i + 1][...]                    # (1, C_out), f32
        # MXU matmul with f32 accumulation (operands may be bf16 on v6e/v7x).
        y = jnp.dot(act, w, preferred_element_type=jnp.float32)   # (nb*n, C_out) f32
        y = jnp.maximum(y + b, 0.0)                    # folded BN bias + ReLU (f32 VPU)
        # Per-batch max over each batch's n points (static, n-aligned row slices).
        zs = [jnp.max(y[j * n:(j + 1) * n, :], axis=0, keepdims=True)
              for j in range(nb)]
        z = zs[0] if nb == 1 else jnp.concatenate(zs, axis=0)     # (nb, C_out)
        z_refs[i][...] = z.astype(z_refs[i].dtype)
        if i + 1 < num_layers:
            # Next layer's input stays on-chip; full y is never written to HBM.
            act = y.astype(mxu_dtype)


def cpointnet_linear_forward(x, params, *, mxu_dtype=jnp.float32):
    """CPointNetLinear forward (inference-mode BatchNorm).

    x: (B, C0, N) float32 in Conv1d layout (batch, channels, points)
    params: list of dicts with 'w' (C_out, C_in), 'gamma','beta','mean','var' (C_out,)
    mxu_dtype: jnp.float32 (safe everywhere) or jnp.bfloat16 (v6e/v7x MXU operands)
    returns: (B, sum C_out) float32
    """
    B, C0, N = x.shape
    num_layers = len(params)
    eps = 1e-5

    # Fold inference-mode BatchNorm into weight/bias once on the host, and
    # pre-transpose W' to (C_in, C_out) so its lane dim is the wider C_out.
    ws, bs, couts = [], [], []
    for p in params:
        s = p["gamma"] * jax.lax.rsqrt(p["var"] + eps)            # (C_out,)
        ws.append((p["w"] * s[:, None]).T.astype(mxu_dtype))      # (C_in, C_out)
        bs.append((p["beta"] - p["mean"] * s)[None, :].astype(jnp.float32))
        couts.append(p["w"].shape[0])

    # Grid: keep 2 parallel steps when B allows it (both v7x TensorCores busy),
    # each step packing nb = B/G whole batches into the matmul's row dimension.
    G = 2 if (B >= 2 and B % 2 == 0) else 1
    nb = B // G
    # TODO(synk): for large B*N or wide channels, additionally tile over points and
    # size activation tiles against v7x's 64 MiB VMEM (not v5e/v6e's 128 MiB).

    # Collapse batch into the row dim: (B, C0, N) -> (B*N, C0).
    x2 = jnp.transpose(x, (0, 2, 1)).reshape(B * N, C0).astype(mxu_dtype)

    in_specs = [pl.BlockSpec((nb * N, C0), lambda g: (g, 0))]
    inputs = [x2]
    for w, b in zip(ws, bs):
        in_specs.append(pl.BlockSpec(w.shape, lambda g: (0, 0)))  # broadcast every step
        in_specs.append(pl.BlockSpec(b.shape, lambda g: (0, 0)))
        inputs += [w, b]

    out_shape = tuple(jax.ShapeDtypeStruct((G, nb, c), jnp.float32) for c in couts)
    out_specs = [pl.BlockSpec((pl.Squeezed(), nb, c), lambda g: (g, 0, 0)) for c in couts]

    kernel = functools.partial(_fused_pointnet_kernel, num_layers=num_layers,
                               nb=nb, n=N, mxu_dtype=mxu_dtype)
    zs = pl.pallas_call(
        kernel,
        out_shape=out_shape,
        grid_spec=pltpu.PrefetchScalarGridSpec(
            num_scalar_prefetch=0,
            grid=(G,),
            in_specs=in_specs,
            out_specs=out_specs,
        ),
        compiler_params=pltpu.CompilerParams(dimension_semantics=("parallel",)),
    )(*inputs)

    # (G, nb, C_i) -> (B, C_i); one tiny concat builds the module's (B, sum C_out) output.
    return jnp.concatenate([z.reshape(B, c) for z, c in zip(zs, couts)], axis=1)


def _reference_forward(x, params):
    """Pure-JAX reference (inference-mode BatchNorm) for correctness check."""
    eps = 1e-5
    B = x.shape[0]
    outs = []
    for p in params:
        y = jnp.einsum("oc,bcn->bon", p["w"], x)
        s = (p["gamma"] / jnp.sqrt(p["var"] + eps))[None, :, None]
        b = (p["beta"] - p["mean"] * p["gamma"] / jnp.sqrt(p["var"] + eps))[None, :, None]
        y = jnp.maximum(y * s + b, 0.0)
        outs.append(jnp.max(y, axis=2, keepdims=True))
        x = y
    return jnp.concatenate(outs, axis=1).reshape(B, -1)


if __name__ == "__main__":
    # Small shapes consistent with the module: channels = [8, 32, 64], 128 points.
    B = 2
    channels = [8, 32, 64]
    N = 128

    key = jax.random.PRNGKey(0)
    key, kx = jax.random.split(key)
    x = jax.random.normal(kx, (B, channels[0], N), dtype=jnp.float32)

    params = []
    for i in range(1, len(channels)):
        c_in, c_out = channels[i - 1], channels[i]
        key, kw, kg, kb, km, kv = jax.random.split(key, 6)
        params.append(dict(
            w=jax.random.normal(kw, (c_out, c_in), dtype=jnp.float32)
              * (2.0 / c_in) ** 0.5,
            gamma=1.0 + 0.1 * jax.random.normal(kg, (c_out,), dtype=jnp.float32),
            beta=0.1 * jax.random.normal(kb, (c_out,), dtype=jnp.float32),
            mean=0.1 * jax.random.normal(km, (c_out,), dtype=jnp.float32),
            var=jnp.abs(1.0 + 0.1 * jax.random.normal(kv, (c_out,), dtype=jnp.float32)),
        ))

    fwd = jax.jit(cpointnet_linear_forward, static_argnames=("mxu_dtype",))
    ref = _reference_forward(x, params)

    # f32 MXU operands (safe on all generations, incl. v5e): tight tolerance.
    out = jax.block_until_ready(fwd(x, params))
    assert out.shape == (B, sum(channels[1:])), out.shape
    assert jnp.allclose(out, ref, atol=1e-4, rtol=1e-4), "f32 kernel mismatch vs reference"

    # bf16 MXU operands (recommended on v6e/v7x; accumulation & elementwise stay f32).
    out_bf16 = jax.block_until_ready(fwd(x, params, mxu_dtype=jnp.bfloat16))
    assert out_bf16.shape == (B, sum(channels[1:]))
    assert jnp.allclose(out_bf16, ref, atol=1e-1, rtol=1e-1), "bf16 kernel mismatch vs reference"

    print("KERNEL_OK")
</pallas_src>

<mosaic_0001>
module attributes {stable_mosaic.version = 11 : i64} {
  func.func @_fused_pointnet_kernel(%arg0: i32, %arg1: memref<128x8xf32, #tpu.memory_space<vmem>>, %arg2: memref<8x32xf32, #tpu.memory_space<vmem>>, %arg3: memref<1x32xf32, #tpu.memory_space<vmem>>, %arg4: memref<32x64xf32, #tpu.memory_space<vmem>>, %arg5: memref<1x64xf32, #tpu.memory_space<vmem>>, %arg6: memref<1x1x32xf32, #tpu.memory_space<vmem>>, %arg7: memref<1x1x64xf32, #tpu.memory_space<vmem>>) attributes {dimension_semantics = [#tpu.dimension_semantics<parallel>], iteration_bounds = array<i64: 2>, scalar_prefetch = 0 : i64, scratch_operands = 0 : i64, tpu.core_type = #tpu.core_type<tc>, window_params = [{transform_indices = @transform_0, window_bounds = array<i64: 128, 8>}, {pipeline_mode = #tpu.pipeline_mode<synchronous>, transform_indices = @transform_1, window_bounds = array<i64: 8, 32>}, {pipeline_mode = #tpu.pipeline_mode<synchronous>, transform_indices = @transform_2, window_bounds = array<i64: 1, 32>}, {pipeline_mode = #tpu.pipeline_mode<synchronous>, transform_indices = @transform_3, window_bounds = array<i64: 32, 64>}, {pipeline_mode = #tpu.pipeline_mode<synchronous>, transform_indices = @transform_4, window_bounds = array<i64: 1, 64>}, {transform_indices = @transform_5, window_bounds = array<i64: 1, 1, 32>}, {transform_indices = @transform_6, window_bounds = array<i64: 1, 1, 64>}]} {
    %c0 = arith.constant 0 : index
    %c0_0 = arith.constant 0 : index
    %0 = vector.load %arg1[%c0, %c0_0] : memref<128x8xf32, #tpu.memory_space<vmem>>, vector<128x8xf32>
    %c0_1 = arith.constant 0 : index
    %c0_2 = arith.constant 0 : index
    %1 = vector.load %arg2[%c0_1, %c0_2] : memref<8x32xf32, #tpu.memory_space<vmem>>, vector<8x32xf32>
    %c0_3 = arith.constant 0 : index
    %c0_4 = arith.constant 0 : index
    %2 = vector.load %arg3[%c0_3, %c0_4] : memref<1x32xf32, #tpu.memory_space<vmem>>, vector<1x32xf32>
    %cst = arith.constant dense<0.000000e+00> : vector<128x32xf32>
    %3 = tpu.matmul %0, %1, %cst {dimension_numbers = #tpu.dot_dimension_numbers<[1], [0], [0], [1], [0, 0, 1, 1], [], []>} : vector<128x8xf32>, vector<8x32xf32>, vector<128x32xf32> -> vector<128x32xf32>
    %4 = vector.broadcast %2 : vector<1x32xf32> to vector<128x32xf32>
    %5 = arith.addf %3, %4 : vector<128x32xf32>
    %cst_5 = arith.constant 0.000000e+00 : f32
    %6 = vector.broadcast %cst_5 : f32 to vector<128x32xf32>
    %7 = arith.maximumf %5, %6 : vector<128x32xf32>
    %cst_6 = arith.constant dense<0xFF800000> : vector<32xf32>
    %8 = vector.multi_reduction <maximumf>, %7, %cst_6 [0] : vector<128x32xf32> to vector<32xf32>
    %9 = vector.shape_cast %8 : vector<32xf32> to vector<1x32xf32>
    %c0_7 = arith.constant 0 : index
    %c0_8 = arith.constant 0 : index
    %c0_9 = arith.constant 0 : index
    %10 = vector.load %arg6[%c0_7, %c0_8, %c0_9] : memref<1x1x32xf32, #tpu.memory_space<vmem>>, vector<1x1x32xf32>
    %11 = vector.shape_cast %10 : vector<1x1x32xf32> to vector<1x32xf32>
    %12 = vector.shape_cast %9 : vector<1x32xf32> to vector<1x1x32xf32>
    tpu.vector_store %arg6[%c0_7, %c0_8, %c0_9], %12 {strides = array<i32>} : memref<1x1x32xf32, #tpu.memory_space<vmem>>, vector<1x1x32xf32>,
    %c0_10 = arith.constant 0 : index
    %c0_11 = arith.constant 0 : index
    %13 = vector.load %arg4[%c0_10, %c0_11] : memref<32x64xf32, #tpu.memory_space<vmem>>, vector<32x64xf32>
    %c0_12 = arith.constant 0 : index
    %c0_13 = arith.constant 0 : index
    %14 = vector.load %arg5[%c0_12, %c0_13] : memref<1x64xf32, #tpu.memory_space<vmem>>, vector<1x64xf32>
    %cst_14 = arith.constant dense<0.000000e+00> : vector<128x64xf32>
    %15 = tpu.matmul %7, %13, %cst_14 {dimension_numbers = #tpu.dot_dimension_numbers<[1], [0], [0], [1], [0, 0, 1, 1], [], []>} : vector<128x32xf32>, vector<32x64xf32>, vector<128x64xf32> -> vector<128x64xf32>
    %16 = vector.broadcast %14 : vector<1x64xf32> to vector<128x64xf32>
    %17 = arith.addf %15, %16 : vector<128x64xf32>
    %cst_15 = arith.constant 0.000000e+00 : f32
    %18 = vector.broadcast %cst_15 : f32 to vector<128x64xf32>
    %19 = arith.maximumf %17, %18 : vector<128x64xf32>
    %cst_16 = arith.constant dense<0xFF800000> : vector<64xf32>
    %20 = vector.multi_reduction <maximumf>, %19, %cst_16 [0] : vector<128x64xf32> to vector<64xf32>
    %21 = vector.shape_cast %20 : vector<64xf32> to vector<1x64xf32>
    %c0_17 = arith.constant 0 : index
    %c0_18 = arith.constant 0 : index
    %c0_19 = arith.constant 0 : index
    %22 = vector.load %arg7[%c0_17, %c0_18, %c0_19] : memref<1x1x64xf32, #tpu.memory_space<vmem>>, vector<1x1x64xf32>
    %23 = vector.shape_cast %22 : vector<1x1x64xf32> to vector<1x64xf32>
    %24 = vector.shape_cast %21 : vector<1x64xf32> to vector<1x1x64xf32>
    tpu.vector_store %arg7[%c0_17, %c0_18, %c0_19], %24 {strides = array<i32>} : memref<1x1x64xf32, #tpu.memory_space<vmem>>, vector<1x1x64xf32>,
    return
  }
  func.func @transform_0(%arg0: i32) -> (i32, i32) {
    %c0_i32 = arith.constant 0 : i32
    %c0_i32_0 = arith.constant 0 : i32
    return %arg0, %c0_i32 : i32, i32
  }
  func.func @transform_1(%arg0: i32) -> (i32, i32) {
    %c0_i32 = arith.constant 0 : i32
    %c0_i32_0 = arith.constant 0 : i32
    %c0_i32_1 = arith.constant 0 : i32
    return %c0_i32, %c0_i32_0 : i32, i32
  }
  func.func @transform_2(%arg0: i32) -> (i32, i32) {
    %c0_i32 = arith.constant 0 : i32
    %c0_i32_0 = arith.constant 0 : i32
    %c0_i32_1 = arith.constant 0 : i32
    return %c0_i32, %c0_i32_0 : i32, i32
  }
  func.func @transform_3(%arg0: i32) -> (i32, i32) {
    %c0_i32 = arith.constant 0 : i32
    %c0_i32_0 = arith.constant 0 : i32
    %c0_i32_1 = arith.constant 0 : i32
    return %c0_i32, %c0_i32_0 : i32, i32
  }
  func.func @transform_4(%arg0: i32) -> (i32, i32) {
    %c0_i32 = arith.constant 0 : i32
    %c0_i32_0 = arith.constant 0 : i32
    %c0_i32_1 = arith.constant 0 : i32
    return %c0_i32, %c0_i32_0 : i32, i32
  }
  func.func @transform_5(%arg0: i32) -> (i32, i32, i32) {
    %c0_i32 = arith.constant 0 : i32
    %c0_i32_0 = arith.constant 0 : i32
    %c0_i32_1 = arith.constant 0 : i32
    return %arg0, %c0_i32, %c0_i32_0 : i32, i32, i32
  }
  func.func @transform_6(%arg0: i32) -> (i32, i32, i32) {
    %c0_i32 = arith.constant 0 : i32
    %c0_i32_0 = arith.constant 0 : i32
    %c0_i32_1 = arith.constant 0 : i32
    return %arg0, %c0_i32, %c0_i32_0 : i32, i32, i32
  }
}

</mosaic_0001>

<bundles_post_ra>
// kernel: cpointnet_linear_forward.1
= control target key start
LH: loop header
LB: loop body
LE: loop exit
PB: predicated region body
PF: predicated region fallthrough
CT: control target
= control target key end

     0   :  { %s1062_s21 = smov 0   ;;  %s1230_s0 = inlined_call_operand.vmem [shape: f32[256,8], index: 0, kind: input, shape index: {}]   ;;  %s1231_s1 = inlined_call_operand.vmem [shape: f32[8,32], index: 1, kind: input, shape index: {}]   ;;  %s1232_s2 = inlined_call_operand.vmem [shape: f32[1,32], index: 2, kind: input, shape index: {}]   ;;  %s1233_s3 = inlined_call_operand.vmem [shape: f32[32,64], index: 3, kind: input, shape index: {}]   ;;  %s1234_s4 = inlined_call_operand.vmem [shape: f32[1,64], index: 4, kind: input, shape index: {}]   ;;  %s1235_s5 = inlined_call_operand.vmem [shape: f32[2,1,32], index: 5, kind: output, shape index: {0}]   ;;  %s1236_s6 = inlined_call_operand.vmem [shape: f32[2,1,64], index: 6, kind: output, shape index: {1}]  }
   0x1 LB: > { %s1068_s22 = sadd.s32 4294967295, %s1025_s21   ;;  %p869_p0 = scmp.ge.s32.totalorder %s1025_s21, 1  ;;  %s1025_s21 = sphi %s1062_s21, %s17_s21  }
   0x2   : > { %p216_p1 = scmp.lt.s32.totalorder %s1025_s21, 3 }
   0x4   : > { %p217_p2 = pnand %p869_p0, %p216_p1 }
   0x5   : > { %v275_v0 = vld [vmem:[%s1231_s1] sm:$0xff] (!%p217_p2)  ;;  %s870_s25 = sshll.u32 (!%p217_p2), %s1068_s22, 4  ;;  %v534_v2 = vld [vmem:[%s1233_s3 + $0x8] sm:$0xff] (!%p217_p2)  ;;  %vm283_vm0 = vcmask (!%p217_p2), 64512   ;;  %v535_v20 = vld [vmem:[%s1233_s3 + $0x10] sm:$0xff] (!%p217_p2)  ;;  %vm493_vm1 = vcmask (!%p217_p2), 261120  }
   0x6   : > { %220 = sbr.rel (%p217_p2) target bundleno = 501 (0x1f5), region = 40  ;;  %v533_v1 = vld [vmem:[%s1233_s3] sm:$0xff] (!%p217_p2)  ;;  %945 = vmatprep.subr.mxu0 (!%p217_p2), %v275_v0  ;;  %p248_p3 = scmp.lt.s32.totalorder (!%p217_p2), %s870_s25, 31  ;;  %v536_v21 = vld [vmem:[%s1233_s3 + $0x18] sm:$0xff] (!%p217_p2)  ;;  %vm531_vm2 = vcmask (!%p217_p2), 253952   ;;  %vm753_vm3 = vcmask (!%p217_p2), 523264  }
   0x7   : > { %v1003_v3 = vpack.c.bf16 (!%p217_p2), %v534_v2, %v533_v1  ;;  %946 = vmatpush3.msra.mxu0 (!%p217_p2), %v275_v0  ;;  %v1007_v22 = vpack.c.bf16 (!%p217_p2), %v536_v21, %v535_v20  ;;  %v1128_v23 = vld [vmem:[%s1232_s2] ss:$0 sm:$0xff] (!%p217_p2)  ;;  %p253_p4 = scmp.lt.s32.totalorder (!%p217_p2), %s1068_s22, 1  ;;  %vm791_vm4 = vcmask (!%p217_p2), 516096  }
   0x9   : > { %1004 = vmatprep.subr.bf16.mxu1 (!%p217_p2), %v1003_v3 }
   0xa   : > { %1006 = vmatpush3.bf16.msra.mxu1 (!%p217_p2), %v1003_v3 }
   0xb   : > { %1008 = vmatprep.subr.bf16.mxu1 (!%p217_p2), %v1007_v22 }
   0xd   : > { %s1238_s25 = smov (!%p248_p3, %s870_s25), 31  ;;  %s1240_s22 = smov (!%p253_p4, %s1068_s22), 1 }
   0xe   : > { %s871_s30 = sshll.u32 %s1238_s25, 3  ;;  %1010 = vmatpush3.bf16.msra.mxu1 %v1007_v22  ;;  %s255_s18 = scalar_lea.vmem %s1235_s5, %s1240_s22 }
   0xf   : > { %s1085_s9 = scalar_lea.vmem %s1230_s0, %s871_s30  ;;  %s258_s25 = scalar_lea.vmem %s1236_s6, %s1240_s22 }
  0x10   : > { %v259_v4 = vld [vmem:[%s1085_s9] sm:$0xff]  ;;  %v260_v5 = vld [vmem:[%s1085_s9 + $0x8] sm:$0xff]  ;;  %v261_v6 = vld [vmem:[%s1085_s9 + $0x10] sm:$0xff] }
  0x11   : > { %947 = vmatprep.mubr.msk.f32.mxu0 %vm283_vm0, %v259_v4  ;;  %v262_v7 = vld [vmem:[%s1085_s9 + $0x18] sm:$0xff]  ;;  %v263_v8 = vld [vmem:[%s1085_s9 + $0x20] sm:$0xff]  ;;  %v264_v9 = vld [vmem:[%s1085_s9 + $0x28] sm:$0xff] }
  0x12   : > { %948 = vmatmul.mubr.msk.f32.vlgmr.msra.gmra.mrb[0].mxu0 %vm283_vm0, %v260_v5  ;;  %v265_v10 = vld [vmem:[%s1085_s9 + $0x30] sm:$0xff]  ;;  %v266_v11 = vld [vmem:[%s1085_s9 + $0x38] sm:$0xff]  ;;  %v267_v12 = vld [vmem:[%s1085_s9 + $0x40] sm:$0xff] }
  0x13   : > { %950 = vmatprep.mubr.msk.f32.mxu0 %vm283_vm0, %v261_v6  ;;  %v268_v13 = vld [vmem:[%s1085_s9 + $0x48] sm:$0xff]  ;;  %v269_v14 = vld [vmem:[%s1085_s9 + $0x50] sm:$0xff]  ;;  %v270_v15 = vld [vmem:[%s1085_s9 + $0x58] sm:$0xff] }
  0x14   : > { %v271_v16 = vld [vmem:[%s1085_s9 + $0x60] sm:$0xff]  ;;  %v272_v17 = vld [vmem:[%s1085_s9 + $0x68] sm:$0xff]  ;;  %v273_v18 = vld [vmem:[%s1085_s9 + $0x70] sm:$0xff] }
  0x15   : > { %v274_v19 = vld [vmem:[%s1085_s9 + $0x78] sm:$0xff] }
  0x16   : > { %951 = vmatmul.mubr.msk.f32.gmra.mrb[2].mxu0 %vm283_vm0, %v262_v7 }
  0x17   : > { %953 = vmatprep.mubr.msk.f32.mxu0 %vm283_vm0, %v263_v8 }
  0x1a   : > { %954 = vmatmul.mubr.msk.f32.gmra.mrb[4].mxu0 %vm283_vm0, %v264_v9 }
  0x1b   : > { %956 = vmatprep.mubr.msk.f32.mxu0 %vm283_vm0, %v265_v10 }
  0x1e   : > { %957 = vmatmul.mubr.msk.f32.gmra.mrb[6].mxu0 %vm283_vm0, %v266_v11 }
  0x1f   : > { %959 = vmatprep.mubr.msk.f32.mxu0 %vm283_vm0, %v267_v12 }
  0x22   : > { %960 = vmatmul.mubr.msk.f32.gmra.mrb[8].mxu0 %vm283_vm0, %v268_v13 }
  0x23   : > { %962 = vmatprep.mubr.msk.f32.mxu0 %vm283_vm0, %v269_v14 }
  0x26   : > { %963 = vmatmul.mubr.msk.f32.gmra.mrb[10].mxu0 %vm283_vm0, %v270_v15 }
  0x27   : > { %965 = vmatprep.mubr.msk.f32.mxu0 %vm283_vm0, %v271_v16 }
  0x2a   : > { %966 = vmatmul.mubr.msk.f32.gmra.mrb[12].mxu0 %vm283_vm0, %v272_v17 }
  0x2b   : > { %968 = vmatprep.mubr.msk.f32.mxu0 %vm283_vm0, %v273_v18 }
  0x2e   : > { %969 = vmatmul.mubr.msk.f32.gmra.mrb[14].mxu0 %vm283_vm0, %v274_v19 }
  0xe5   : > { %v949_v24 = vpop.f32.mrb[0].mxu0 }
  0xe6   : > { %v404_v25 = vadd.f32 %v949_v24, %v1128_v23  ;;  %v398_v26 = vpop.f32.mrb[1].mxu0 }
  0xe7   : > { %v399_v27 = vadd.f32 %v1128_v23, %v398_v26 }
  0xe8   : > { %v478_v30 = vmax.f32 %v404_v25, 0.0 }
  0xe9   : > { %v477_v28 = vmax.f32 %v399_v27, 0.0  ;;  %v952_v29 = vpop.f32.mrb[2].mxu0 }
  0xea   : > { %v414_v31 = vadd.f32 %v952_v29, %v1128_v23  ;;  %v408_v32 = vpop.f32.mrb[3].mxu0  ;;  %v495_v43 = vsel %vm493_vm1, %v478_v30, -inf }
  0xeb   : > { %v409_v33 = vadd.f32 %v1128_v23, %v408_v32  ;;  %979 = vmatprep.mubr.msk.f32.mxu1 %vm493_vm1, %v477_v28  ;;  %v494_v47 = vsel %vm493_vm1, %v477_v28, -inf }
  0xec   : > { %980 = vmatmul.mubr.msk.f32.vlgmr.msra.gmra.mrb[0].mxu1 %vm493_vm1, %v478_v30  ;;  %v480_v36 = vmax.f32 %v414_v31, 0.0 }
  0xed   : > { %v479_v34 = vmax.f32 %v409_v33, 0.0  ;;  %v955_v35 = vpop.f32.mrb[4].mxu0 }
  0xee   : > { %v424_v37 = vadd.f32 %v955_v35, %v1128_v23  ;;  %v418_v38 = vpop.f32.mrb[5].mxu0  ;;  %v497_v55 = vsel %vm493_vm1, %v480_v36, -inf }
  0xef   : > { %v419_v39 = vadd.f32 %v1128_v23, %v418_v38  ;;  %982 = vmatprep.mubr.msk.f32.mxu1 %vm493_vm1, %v479_v34  ;;  %v496_v59 = vsel %vm493_vm1, %v479_v34, -inf }
  0xf0   : > { %v482_v40 = vmax.f32 %v424_v37, 0.0  ;;  %983 = vmatmul.mubr.msk.f32.gmra.mrb[2].mxu1 %vm493_vm1, %v480_v36 }
  0xf1   : > { %v481_v41 = vmax.f32 %v419_v39, 0.0  ;;  %v958_v42 = vpop.f32.mrb[6].mxu0 }
  0xf2   : > { %v500_v44 = vsel %vm493_vm1, %v482_v40, -inf  ;;  %v434_v45 = vadd.f32 %v958_v42, %v1128_v23  ;;  %v428_v46 = vpop.f32.mrb[7].mxu0 }
  0xf3   : > { %v501_v48 = vmax.f32 %v495_v43, %v500_v44  ;;  %v498_v49 = vsel %vm493_vm1, %v481_v41, -inf  ;;  %v429_v50 = vadd.f32 %v1128_v23, %v428_v46  ;;  %985 = vmatprep.mubr.msk.f32.mxu1 %vm493_vm1, %v481_v41  ;;  %v1189_v46 = vld [vmem:[%s1234_s4] ss:$0 sm:$0xff] }
  0xf4   : > { %v499_v51 = vmax.f32 %v494_v47, %v498_v49  ;;  %v484_v52 = vmax.f32 %v434_v45, 0.0  ;;  %986 = vmatmul.mubr.msk.f32.gmra.mrb[4].mxu1 %vm493_vm1, %v482_v40 }
  0xf5   : > { %v483_v53 = vmax.f32 %v429_v50, 0.0  ;;  %v961_v54 = vpop.f32.mrb[8].mxu0 }
  0xf6   : > { %v504_v56 = vsel %vm493_vm1, %v484_v52, -inf  ;;  %v444_v57 = vadd.f32 %v961_v54, %v1128_v23  ;;  %v438_v58 = vpop.f32.mrb[9].mxu0 }
  0xf7   : > { %v505_v60 = vmax.f32 %v497_v55, %v504_v56  ;;  %v502_v61 = vsel %vm493_vm1, %v483_v53, -inf  ;;  %v439_v62 = vadd.f32 %v1128_v23, %v438_v58  ;;  %988 = vmatprep.mubr.msk.f32.mxu1 %vm493_vm1, %v483_v53 }
  0xf8   : > { %v503_v63 = vmax.f32 %v496_v59, %v502_v61  ;;  %v486_v0 = vmax.f32 %v444_v57, 0.0  ;;  %989 = vmatmul.mubr.msk.f32.gmra.mrb[6].mxu1 %vm493_vm1, %v484_v52 }
  0xf9   : > { %v485_v1 = vmax.f32 %v439_v62, 0.0  ;;  %v964_v2 = vpop.f32.mrb[10].mxu0 }
  0xfa   : > { %v508_v3 = vsel %vm493_vm1, %v486_v0, -inf  ;;  %v454_v4 = vadd.f32 %v964_v2, %v1128_v23  ;;  %v448_v5 = vpop.f32.mrb[11].mxu0 }
  0xfb   : > { %v509_v6 = vmax.f32 %v501_v48, %v508_v3  ;;  %v506_v7 = vsel %vm493_vm1, %v485_v1, -inf  ;;  %v449_v8 = vadd.f32 %v1128_v23, %v448_v5  ;;  %991 = vmatprep.mubr.msk.f32.mxu1 %vm493_vm1, %v485_v1 }
  0xfc   : > { %v507_v9 = vmax.f32 %v499_v51, %v506_v7  ;;  %v488_v10 = vmax.f32 %v454_v4, 0.0  ;;  %992 = vmatmul.mubr.msk.f32.gmra.mrb[8].mxu1 %vm493_vm1, %v486_v0 }
  0xfd   : > { %v487_v11 = vmax.f32 %v449_v8, 0.0  ;;  %v967_v12 = vpop.f32.mrb[12].mxu0 }
  0xfe   : > { %v512_v13 = vsel %vm493_vm1, %v488_v10, -inf  ;;  %v464_v14 = vadd.f32 %v967_v12, %v1128_v23  ;;  %v458_v15 = vpop.f32.mrb[13].mxu0 }
  0xff   : > { %v513_v16 = vmax.f32 %v505_v60, %v512_v13  ;;  %v510_v17 = vsel %vm493_vm1, %v487_v11, -inf  ;;  %v459_v18 = vadd.f32 %v1128_v23, %v458_v15  ;;  %994 = vmatprep.mubr.msk.f32.mxu1 %vm493_vm1, %v487_v11 }
 0x100   : > { %v511_v19 = vmax.f32 %v503_v63, %v510_v17  ;;  %v490_v20 = vmax.f32 %v464_v14, 0.0  ;;  %995 = vmatmul.mubr.msk.f32.gmra.mrb[10].mxu1 %vm493_vm1, %v488_v10 }
 0x101   : > { %v489_v21 = vmax.f32 %v459_v18, 0.0  ;;  %v970_v22 = vpop.f32.mrb[14].mxu0 }
 0x102   : > { %v516_v24 = vsel %vm493_vm1, %v490_v20, -inf  ;;  %v474_v25 = vadd.f32 %v970_v22, %v1128_v23  ;;  %v468_v26 = vpop.f32.mrb[15].mxu0 }
 0x103   : > { %v517_v27 = vmax.f32 %v509_v6, %v516_v24  ;;  %v514_v28 = vsel %vm493_vm1, %v489_v21, -inf  ;;  %v469_v29 = vadd.f32 %v1128_v23, %v468_v26  ;;  %997 = vmatprep.mubr.msk.f32.mxu1 %vm493_vm1, %v489_v21 }
 0x104   : > { %v515_v30 = vmax.f32 %v507_v9, %v514_v28  ;;  %v492_v31 = vmax.f32 %v474_v25, 0.0  ;;  %998 = vmatmul.mubr.msk.f32.gmra.mrb[12].mxu1 %vm493_vm1, %v490_v20 }
 0x105   : > { %v491_v32 = vmax.f32 %v469_v29, 0.0 }
 0x106   : > { %v522_v33 = vmax.f32 %v515_v30, %v517_v27  ;;  %v520_v34 = vsel %vm493_vm1, %v492_v31, -inf }
 0x107   : > { %v521_v35 = vmax.f32 %v513_v16, %v520_v34  ;;  %v518_v36 = vsel %vm493_vm1, %v491_v32, -inf  ;;  %1000 = vmatprep.mubr.msk.f32.mxu1 %vm493_vm1, %v491_v32 }
 0x108   : > { %v519_v37 = vmax.f32 %v511_v19, %v518_v36  ;;  %1001 = vmatmul.mubr.msk.f32.gmra.mrb[14].mxu1 %vm493_vm1, %v492_v31 }
 0x10a   : > { %v523_v23 = vmax.f32 %v519_v37, %v521_v35 }
 0x10c   : > { %v524_v38 = vmax.f32 %v522_v33, %v523_v23 }
 0x10e   : > { %v525_v39 = vrot.slane %v524_v38, 4 }
 0x110   : > { %v526_v40 = vmax.f32 %v524_v38, %v525_v39 }
 0x112   : > { %v527_v41 = vrot.slane %v526_v40, 2 }
 0x114   : > { %v528_v42 = vmax.f32 %v526_v40, %v527_v41 }
 0x116   : > { %v529_v43 = vrot.slane %v528_v42, 1 }
 0x118   : > { %v530_v44 = vmax.f32 %v528_v42, %v529_v43 }
 0x11a   : > { %532 = vst.msk [vmem:[%s255_s18] sm:$0x1] %vm531_vm2, %v530_v44 }
 0x1bf   : > { %v981_v45 = vpop.f32.mrb[0].mxu1 }
 0x1c0   : > { %v658_v47 = vpop.f32.mrb[1].mxu1  ;;  %v664_v48 = vadd.f32 %v981_v45, %v1189_v46 }
 0x1c1   : > { %v659_v50 = vadd.f32 %v1189_v46, %v658_v47 }
 0x1c2   : > { %v738_v52 = vmax.f32 %v664_v48, 0.0 }
 0x1c3   : > { %v984_v49 = vpop.f32.mrb[2].mxu1  ;;  %v737_v54 = vmax.f32 %v659_v50, 0.0 }
 0x1c4   : > { %v668_v51 = vpop.f32.mrb[3].mxu1  ;;  %v674_v55 = vadd.f32 %v984_v49, %v1189_v46  ;;  %v755_v61 = vsel %vm753_vm3, %v738_v52, -inf }
 0x1c5   : > { %v669_v58 = vadd.f32 %v1189_v46, %v668_v51  ;;  %v754_v0 = vsel %vm753_vm3, %v737_v54, -inf }
 0x1c6   : > { %v740_v1 = vmax.f32 %v674_v55, 0.0 }
 0x1c7   : > { %v987_v53 = vpop.f32.mrb[4].mxu1  ;;  %v739_v5 = vmax.f32 %v669_v58, 0.0 }
 0x1c8   : > { %v684_v56 = vadd.f32 %v987_v53, %v1189_v46  ;;  %v678_v57 = vpop.f32.mrb[5].mxu1  ;;  %v757_v13 = vsel %vm753_vm3, %v740_v1, -inf }
 0x1c9   : > { %v679_v59 = vadd.f32 %v1189_v46, %v678_v57  ;;  %v756_v17 = vsel %vm753_vm3, %v739_v5, -inf }
 0x1ca   : > { %v742_v60 = vmax.f32 %v684_v56, 0.0 }
 0x1cb   : > { %v741_v62 = vmax.f32 %v679_v59, 0.0  ;;  %v990_v63 = vpop.f32.mrb[6].mxu1 }
 0x1cc   : > { %v760_v2 = vsel %vm753_vm3, %v742_v60, -inf  ;;  %v694_v3 = vadd.f32 %v990_v63, %v1189_v46  ;;  %v688_v4 = vpop.f32.mrb[7].mxu1 }
 0x1cd   : > { %v761_v6 = vmax.f32 %v755_v61, %v760_v2  ;;  %v758_v7 = vsel %vm753_vm3, %v741_v62, -inf  ;;  %v689_v8 = vadd.f32 %v1189_v46, %v688_v4 }
 0x1ce   : > { %v759_v9 = vmax.f32 %v754_v0, %v758_v7  ;;  %v744_v10 = vmax.f32 %v694_v3, 0.0 }
 0x1cf   : > { %v743_v11 = vmax.f32 %v689_v8, 0.0  ;;  %v993_v12 = vpop.f32.mrb[8].mxu1 }
 0x1d0   : > { %v764_v14 = vsel %vm753_vm3, %v744_v10, -inf  ;;  %v704_v15 = vadd.f32 %v993_v12, %v1189_v46  ;;  %v698_v16 = vpop.f32.mrb[9].mxu1 }
 0x1d1   : > { %v765_v18 = vmax.f32 %v757_v13, %v764_v14  ;;  %v762_v19 = vsel %vm753_vm3, %v743_v11, -inf  ;;  %v699_v20 = vadd.f32 %v1189_v46, %v698_v16 }
 0x1d2   : > { %v763_v21 = vmax.f32 %v756_v17, %v762_v19  ;;  %v746_v22 = vmax.f32 %v704_v15, 0.0 }
 0x1d3   : > { %v745_v24 = vmax.f32 %v699_v20, 0.0  ;;  %v996_v25 = vpop.f32.mrb[10].mxu1 }
 0x1d4   : > { %v768_v26 = vsel %vm753_vm3, %v746_v22, -inf  ;;  %v714_v27 = vadd.f32 %v996_v25, %v1189_v46  ;;  %v708_v28 = vpop.f32.mrb[11].mxu1 }
 0x1d5   : > { %v769_v29 = vmax.f32 %v761_v6, %v768_v26  ;;  %v766_v30 = vsel %vm753_vm3, %v745_v24, -inf  ;;  %v709_v31 = vadd.f32 %v1189_v46, %v708_v28 }
 0x1d6   : > { %v767_v32 = vmax.f32 %v759_v9, %v766_v30  ;;  %v748_v33 = vmax.f32 %v714_v27, 0.0 }
 0x1d7   : > { %v747_v34 = vmax.f32 %v709_v31, 0.0  ;;  %v999_v35 = vpop.f32.mrb[12].mxu1 }
 0x1d8   : > { %v772_v36 = vsel %vm753_vm3, %v748_v33, -inf  ;;  %v724_v37 = vadd.f32 %v999_v35, %v1189_v46  ;;  %v718_v23 = vpop.f32.mrb[13].mxu1 }
 0x1d9   : > { %v773_v38 = vmax.f32 %v765_v18, %v772_v36  ;;  %v770_v39 = vsel %vm753_vm3, %v747_v34, -inf  ;;  %v719_v40 = vadd.f32 %v1189_v46, %v718_v23 }
 0x1da   : > { %v771_v41 = vmax.f32 %v763_v21, %v770_v39  ;;  %v750_v42 = vmax.f32 %v724_v37, 0.0 }
 0x1db   : > { %v749_v43 = vmax.f32 %v719_v40, 0.0  ;;  %v1002_v44 = vpop.f32.mrb[14].mxu1 }
 0x1dc   : > { %v776_v45 = vsel %vm753_vm3, %v750_v42, -inf  ;;  %v734_v47 = vadd.f32 %v1002_v44, %v1189_v46  ;;  %v728_v48 = vpop.f32.mrb[15].mxu1 }
 0x1dd   : > { %v777_v49 = vmax.f32 %v769_v29, %v776_v45  ;;  %v774_v50 = vsel %vm753_vm3, %v749_v43, -inf  ;;  %v729_v51 = vadd.f32 %v1189_v46, %v728_v48 }
 0x1de   : > { %v775_v52 = vmax.f32 %v767_v32, %v774_v50  ;;  %v752_v53 = vmax.f32 %v734_v47, 0.0 }
 0x1df   : > { %v751_v54 = vmax.f32 %v729_v51, 0.0 }
 0x1e0   : > { %v782_v55 = vmax.f32 %v775_v52, %v777_v49  ;;  %v780_v56 = vsel %vm753_vm3, %v752_v53, -inf }
 0x1e1   : > { %v781_v57 = vmax.f32 %v773_v38, %v780_v56  ;;  %v778_v58 = vsel %vm753_vm3, %v751_v54, -inf }
 0x1e2   : > { %v779_v59 = vmax.f32 %v771_v41, %v778_v58 }
 0x1e4   : > { %v783_v60 = vmax.f32 %v779_v59, %v781_v57 }
 0x1e6   : > { %v784_v61 = vmax.f32 %v782_v55, %v783_v60 }
 0x1e8   : > { %v785_v62 = vrot.slane %v784_v61, 4 }
 0x1ea   : > { %v786_v63 = vmax.f32 %v784_v61, %v785_v62 }
 0x1ec   : > { %v787_v0 = vrot.slane %v786_v63, 2 }
 0x1ee   : > { %v788_v1 = vmax.f32 %v786_v63, %v787_v0 }
 0x1f0   : > { %v789_v2 = vrot.slane %v788_v1, 1 }
 0x1f2   : > { %v790_v46 = vmax.f32 %v788_v1, %v789_v2 }
 0x1f4   : > { %792 = vst.msk [vmem:[%s258_s25] sm:$0x1] %vm791_vm4, %v790_v46 }
 0x1f5 PF: > { %s17_s21 = sadd.s32 1, %s1025_s21  }
 0x1f6   : > { %p14_p5 = scmp.ge.s32.totalorder %s17_s21, 4  }
 0x1f8   :  { %16 = sbr.rel (!%p14_p5) target bundleno = 1 (0x1), region = 82 }

</bundles_post_ra>
